<compile_context>
chip_gen: v7x
topology: tpu7x:2x2x1
jax: 0.10.0
libtpu: 0.0.40
codegen_flags: <defaults>
</compile_context>

<pallas_src>
import functools

import jax
import jax.numpy as jnp
from jax.experimental import pallas as pl
from jax.experimental.pallas import tpu as pltpu


def _round_up(x, m):
    return ((x + m - 1) // m) * m


def _sublane_multiple(dtype):
    return {4: 8, 2: 16, 1: 32}.get(jnp.dtype(dtype).itemsize, 8)


def _vmem_budget_and_limit():
    """(streamed-block byte budget, vmem_limit_bytes); generation-aware, safe fallback."""
    limit = 32 << 20
    try:
        cap = getattr(pltpu.get_tpu_info(), "vmem_capacity_bytes", None)
        if cap:
            limit = min(32 << 20, int(cap) // 2)   # v7x: 64 MiB/TC -> 32 MiB limit
    except Exception:
        pass
    budget = max(4 << 20, limit // 2 - (2 << 20))
    return budget, limit


def _choose_tile_n(N, Cx, Cy, dtypes, budget_bytes, max_tile=1024):
    """Row-tile size: big (amortize per-step overhead), VMEM-safe, >=4 grid steps."""
    px_d, tx_d, py_d, ty_d = dtypes
    sub = max(_sublane_multiple(d) for d in dtypes)
    isz = lambda d: jnp.dtype(d).itemsize
    # Streamed (double-buffered) bytes per row; the (TN,1) f32 mask block lane-pads
    # to 128 lanes in VMEM => 512 B/row per buffer.
    stream_per_row = Cx * (isz(px_d) + isz(tx_d)) + Cy * (isz(py_d) + isz(ty_d)) + 128 * 4
    # f32 working-set headroom for in-kernel intermediates (not double-buffered).
    work_per_row = 3 * (Cx + Cy) * 4
    budget_rows = max(sub, budget_bytes // (2 * stream_per_row + work_per_row))
    # Keep >= 4 grid steps so the "parallel" row axis can shard across both v7x TCs.
    core_cap = _round_up(pl.cdiv(N, 4), sub)
    tile = min(max_tile, budget_rows, core_cap, _round_up(N, sub))
    return max(sub, (tile // sub) * sub)


def _simcc_soft_kernel(px_ref, tx_ref, py_ref, ty_ref, mask_ref,
                       outx_ref, outy_ref, *, n_rows, tile_n):
    # The last grid step may read past row N (undefined bytes), so invalid rows are
    # zeroed BEFORE exp/log -- garbage logits must never reach the transcendentals.
    row0 = pl.program_id(0) * tile_n
    row_ids = row0 + jax.lax.broadcasted_iota(jnp.int32, (tile_n, 1), 0)
    valid = row_ids < n_rows                                           # [TN, 1] bool
    mask = jnp.where(valid, mask_ref[...].astype(jnp.float32), 0.0)    # [TN, 1]

    def masked_kl_partial(pred_ref, tgt_ref, out_ref):
        logits = jnp.where(valid, pred_ref[...].astype(jnp.float32), 0.0)
        t = jnp.where(valid, tgt_ref[...].astype(jnp.float32), 0.0)
        m = jnp.max(logits, axis=1, keepdims=True)
        shifted = logits - m
        lse = jnp.log(jnp.sum(jnp.exp(shifted), axis=1, keepdims=True))
        log_p = shifted - lse                                          # log_softmax
        # KLDivLoss(reduction='none', log_target=False): t*(log t - log_p), 0 at t==0.
        safe_t = jnp.where(t > 0, t, 1.0)
        kl = jnp.where(t > 0, t * (jnp.log(safe_t) - log_p), 0.0)
        # Lane-dense per-tile partial: reduce masked kl over rows (sublanes), keep
        # lanes; the tiny lane/tile reduction finishes in the wrapper.
        partial = jnp.sum(kl * mask, axis=0, keepdims=True)            # [1, C]
        out_ref[...] = partial.reshape(out_ref.shape)                  # (1, 1, C)

    masked_kl_partial(px_ref, tx_ref, outx_ref)
    masked_kl_partial(py_ref, ty_ref, outy_ref)


def _masked_kl_partial_sums(px, tx, py, ty, mask2d, tile_n, num_tiles, vmem_limit):
    N, Cx = px.shape
    Cy = py.shape[1]
    in_bytes = sum(int(a.size) * jnp.dtype(a.dtype).itemsize
                   for a in (px, tx, py, ty, mask2d))
    out_bytes = num_tiles * (Cx + Cy) * 4
    total_elems = N * (Cx + Cy)
    kernel = functools.partial(_simcc_soft_kernel, n_rows=N, tile_n=tile_n)
    return pl.pallas_call(
        kernel,
        out_shape=(
            jax.ShapeDtypeStruct((num_tiles, 1, Cx), jnp.float32),
            jax.ShapeDtypeStruct((num_tiles, 1, Cy), jnp.float32),
        ),
        grid_spec=pltpu.PrefetchScalarGridSpec(
            num_scalar_prefetch=0,
            grid=(num_tiles,),
            in_specs=[
                pl.BlockSpec((tile_n, Cx), lambda i: (i, 0)),   # pred_x
                pl.BlockSpec((tile_n, Cx), lambda i: (i, 0)),   # target_x
                pl.BlockSpec((tile_n, Cy), lambda i: (i, 0)),   # pred_y
                pl.BlockSpec((tile_n, Cy), lambda i: (i, 0)),   # target_y
                pl.BlockSpec((tile_n, 1), lambda i: (i, 0)),    # mask
            ],
            out_specs=[
                pl.BlockSpec((1, 1, Cx), lambda i: (i, 0, 0)),
                pl.BlockSpec((1, 1, Cy), lambda i: (i, 0, 0)),
            ],
        ),
        compiler_params=pltpu.CompilerParams(
            dimension_semantics=("parallel",),
            vmem_limit_bytes=int(vmem_limit),
        ),
        cost_estimate=pl.CostEstimate(
            flops=8 * total_elems,
            transcendentals=2 * total_elems,
            bytes_accessed=int(in_bytes + out_bytes),
        ),
    )(px, tx, py, ty, mask2d)


def simcc_loss(pred_x, pred_y, target_x, target_y, mask, x_weight=1.0, y_weight=1.0):
    """Soft SimCC loss (use_soft=True). Returns dict of scalars like the PyTorch module."""
    B, K, Cx = pred_x.shape
    Cy = pred_y.shape[-1]
    N = B * K

    # Keep producer dtype end-to-end (bf16 stays bf16 in HBM); cast in-kernel.
    px = pred_x.reshape(N, Cx)
    py = pred_y.reshape(N, Cy)
    tx = target_x.reshape(N, Cx)
    ty = target_y.reshape(N, Cy)
    mask_flat = mask.reshape(N).astype(jnp.float32)
    mask2d = mask_flat.reshape(N, 1)

    budget, vmem_limit = _vmem_budget_and_limit()
    tile_n = _choose_tile_n(N, Cx, Cy, (px.dtype, tx.dtype, py.dtype, ty.dtype), budget)
    num_tiles = pl.cdiv(N, tile_n)

    partial_x, partial_y = _masked_kl_partial_sums(
        px, tx, py, ty, mask2d, tile_n, num_tiles, vmem_limit)
    sum_x = jnp.sum(partial_x)
    sum_y = jnp.sum(partial_y)

    valid = jnp.maximum(jnp.sum(mask_flat), 1.0)
    mean_x = sum_x / valid
    mean_y = sum_y / valid
    total = x_weight * mean_x + y_weight * mean_y
    return {"total_loss": total, "x_loss": mean_x, "y_loss": mean_y}


def _reference(pred_x, pred_y, target_x, target_y, mask, x_weight=1.0, y_weight=1.0):
    """Pure-JAX reference matching torch semantics (sanity check)."""
    B, K, Cx = pred_x.shape
    Cy = pred_y.shape[-1]
    N = B * K
    px = pred_x.reshape(N, Cx).astype(jnp.float32)
    py = pred_y.reshape(N, Cy).astype(jnp.float32)
    tx = target_x.reshape(N, Cx).astype(jnp.float32)
    ty = target_y.reshape(N, Cy).astype(jnp.float32)
    m = mask.reshape(N).astype(jnp.float32)

    def kl(logits, t):
        lp = jax.nn.log_softmax(logits, axis=1)
        xlogy = jnp.where(t > 0, t * jnp.log(jnp.where(t > 0, t, 1.0)), 0.0)
        return jnp.sum(xlogy - t * lp, axis=1)

    lx = kl(px, tx) * m
    ly = kl(py, ty) * m
    valid = jnp.maximum(jnp.sum(m), 1.0)
    mean_x = jnp.sum(lx) / valid
    mean_y = jnp.sum(ly) / valid
    return {"total_loss": x_weight * mean_x + y_weight * mean_y,
            "x_loss": mean_x, "y_loss": mean_y}


def _run_case(seed, B, K, Cx, Cy, dtype=jnp.float32, rtol=1e-5, atol=1e-5):
    k1, k2, k3, k4, k5 = jax.random.split(jax.random.PRNGKey(seed), 5)
    pred_x = jax.random.normal(k1, (B, K, Cx)).astype(dtype)
    pred_y = jax.random.normal(k2, (B, K, Cy)).astype(dtype)
    target_x = jax.nn.softmax(2.0 * jax.random.normal(k3, (B, K, Cx)), axis=-1).astype(dtype)
    target_y = jax.nn.softmax(2.0 * jax.random.normal(k4, (B, K, Cy)), axis=-1).astype(dtype)
    mask = (jax.random.uniform(k5, (B, K)) > 0.3).astype(jnp.float32)

    out = simcc_loss(pred_x, pred_y, target_x, target_y, mask)
    out = jax.tree_util.tree_map(jax.block_until_ready, out)
    ref = _reference(pred_x, pred_y, target_x, target_y, mask)
    for name in ("total_loss", "x_loss", "y_loss"):
        assert jnp.allclose(out[name], ref[name], rtol=rtol, atol=atol), (
            name, out[name], ref[name])


if __name__ == "__main__":
    # Case 1: f32, N divisible by the chosen tile (B*K = 16).
    _run_case(seed=0, B=2, K=8, Cx=256, Cy=128)
    # Case 2: ragged N (B*K = 15) exercises the partial-edge-block masking path.
    _run_case(seed=0, B=3, K=5, Cx=256, Cy=128)
    # Case 3: bf16 producers stay bf16 in HBM (f32 math in-kernel); same quantized
    # inputs feed the reference, so the tolerance stays tight.
    _run_case(seed=0, B=2, K=8, Cx=256, Cy=128, dtype=jnp.bfloat16, rtol=1e-4, atol=1e-4)
    print("KERNEL_OK")
</pallas_src>

<mosaic_0001>
module attributes {stable_mosaic.version = 11 : i64} {
  func.func @_simcc_soft_kernel(%arg0: i32, %arg1: memref<8x256xf32, #tpu.memory_space<vmem>>, %arg2: memref<8x256xf32, #tpu.memory_space<vmem>>, %arg3: memref<8x128xf32, #tpu.memory_space<vmem>>, %arg4: memref<8x128xf32, #tpu.memory_space<vmem>>, %arg5: memref<8x1xf32, #tpu.memory_space<vmem>>, %arg6: memref<1x1x256xf32, #tpu.memory_space<vmem>>, %arg7: memref<1x1x128xf32, #tpu.memory_space<vmem>>) attributes {dimension_semantics = [#tpu.dimension_semantics<parallel>], iteration_bounds = array<i64: 2>, scalar_prefetch = 0 : i64, scratch_operands = 0 : i64, tpu.core_type = #tpu.core_type<tc>, window_params = [{transform_indices = @transform_0, window_bounds = array<i64: 8, 256>}, {transform_indices = @transform_1, window_bounds = array<i64: 8, 256>}, {transform_indices = @transform_2, window_bounds = array<i64: 8, 128>}, {transform_indices = @transform_3, window_bounds = array<i64: 8, 128>}, {transform_indices = @transform_4, window_bounds = array<i64: 8, 1>}, {transform_indices = @transform_5, window_bounds = array<i64: 1, 1, 256>}, {transform_indices = @transform_6, window_bounds = array<i64: 1, 1, 128>}]} {
    %c8_i32 = arith.constant 8 : i32
    %0 = arith.muli %arg0, %c8_i32 : i32
    %1 = tpu.iota {dimensions = array<i32: 0>} : vector<8x1xi32>
    %2 = vector.broadcast %0 : i32 to vector<8x1xi32>
    %3 = arith.addi %2, %1 : vector<8x1xi32>
    %c16_i32 = arith.constant 16 : i32
    %4 = vector.broadcast %c16_i32 : i32 to vector<8x1xi32>
    %5 = arith.cmpi slt, %3, %4 : vector<8x1xi32>
    %c0 = arith.constant 0 : index
    %c0_0 = arith.constant 0 : index
    %6 = vector.load %arg5[%c0, %c0_0] : memref<8x1xf32, #tpu.memory_space<vmem>>, vector<8x1xf32>
    %cst = arith.constant 0.000000e+00 : f32
    %7 = vector.broadcast %cst : f32 to vector<8x1xf32>
    %8 = arith.select %5, %6, %7 : vector<8x1xi1>, vector<8x1xf32>
    %c0_1 = arith.constant 0 : index
    %c0_2 = arith.constant 0 : index
    %9 = vector.load %arg1[%c0_1, %c0_2] : memref<8x256xf32, #tpu.memory_space<vmem>>, vector<8x256xf32>
    %cst_3 = arith.constant 0.000000e+00 : f32
    %10 = vector.shape_cast %5 : vector<8x1xi1> to vector<8x1xi1>
    %11 = vector.broadcast %10 : vector<8x1xi1> to vector<8x256xi1>
    %12 = vector.broadcast %cst_3 : f32 to vector<8x256xf32>
    %13 = arith.select %11, %9, %12 : vector<8x256xi1>, vector<8x256xf32>
    %c0_4 = arith.constant 0 : index
    %c0_5 = arith.constant 0 : index
    %14 = vector.load %arg2[%c0_4, %c0_5] : memref<8x256xf32, #tpu.memory_space<vmem>>, vector<8x256xf32>
    %cst_6 = arith.constant 0.000000e+00 : f32
    %15 = vector.shape_cast %5 : vector<8x1xi1> to vector<8x1xi1>
    %16 = vector.broadcast %15 : vector<8x1xi1> to vector<8x256xi1>
    %17 = vector.broadcast %cst_6 : f32 to vector<8x256xf32>
    %18 = arith.select %16, %14, %17 : vector<8x256xi1>, vector<8x256xf32>
    %cst_7 = arith.constant dense<0xFF800000> : vector<8xf32>
    %19 = vector.multi_reduction <maximumf>, %13, %cst_7 [1] : vector<8x256xf32> to vector<8xf32>
    %20 = vector.shape_cast %19 : vector<8xf32> to vector<8x1xf32>
    %21 = vector.broadcast %20 : vector<8x1xf32> to vector<8x256xf32>
    %22 = arith.subf %13, %21 : vector<8x256xf32>
    %23 = math.exp %22 : vector<8x256xf32>
    %cst_8 = arith.constant dense<0.000000e+00> : vector<8xf32>
    %24 = vector.multi_reduction <add>, %23, %cst_8 [1] : vector<8x256xf32> to vector<8xf32>
    %25 = vector.shape_cast %24 : vector<8xf32> to vector<8x1xf32>
    %26 = math.log %25 : vector<8x1xf32>
    %27 = vector.broadcast %26 : vector<8x1xf32> to vector<8x256xf32>
    %28 = arith.subf %22, %27 : vector<8x256xf32>
    %cst_9 = arith.constant 0.000000e+00 : f32
    %29 = vector.broadcast %cst_9 : f32 to vector<8x256xf32>
    %30 = arith.cmpf ogt, %18, %29 : vector<8x256xf32>
    %cst_10 = arith.constant 1.000000e+00 : f32
    %31 = vector.broadcast %cst_10 : f32 to vector<8x256xf32>
    %32 = arith.select %30, %18, %31 : vector<8x256xi1>, vector<8x256xf32>
    %cst_11 = arith.constant 0.000000e+00 : f32
    %33 = vector.broadcast %cst_11 : f32 to vector<8x256xf32>
    %34 = arith.cmpf ogt, %18, %33 : vector<8x256xf32>
    %35 = math.log %32 : vector<8x256xf32>
    %36 = arith.subf %35, %28 : vector<8x256xf32>
    %37 = arith.mulf %18, %36 : vector<8x256xf32>
    %cst_12 = arith.constant 0.000000e+00 : f32
    %38 = vector.broadcast %cst_12 : f32 to vector<8x256xf32>
    %39 = arith.select %34, %37, %38 : vector<8x256xi1>, vector<8x256xf32>
    %40 = vector.broadcast %8 : vector<8x1xf32> to vector<8x256xf32>
    %41 = arith.mulf %39, %40 : vector<8x256xf32>
    %cst_13 = arith.constant dense<0.000000e+00> : vector<256xf32>
    %42 = vector.multi_reduction <add>, %41, %cst_13 [0] : vector<8x256xf32> to vector<256xf32>
    %43 = vector.shape_cast %42 : vector<256xf32> to vector<1x256xf32>
    %44 = vector.shape_cast %43 : vector<1x256xf32> to vector<1x1x256xf32>
    %c0_14 = arith.constant 0 : index
    %c0_15 = arith.constant 0 : index
    %c0_16 = arith.constant 0 : index
    %45 = vector.load %arg6[%c0_14, %c0_15, %c0_16] : memref<1x1x256xf32, #tpu.memory_space<vmem>>, vector<1x1x256xf32>
    tpu.vector_store %arg6[%c0_14, %c0_15, %c0_16], %44 {strides = array<i32>} : memref<1x1x256xf32, #tpu.memory_space<vmem>>, vector<1x1x256xf32>,
    %c0_17 = arith.constant 0 : index
    %c0_18 = arith.constant 0 : index
    %46 = vector.load %arg3[%c0_17, %c0_18] : memref<8x128xf32, #tpu.memory_space<vmem>>, vector<8x128xf32>
    %cst_19 = arith.constant 0.000000e+00 : f32
    %47 = vector.shape_cast %5 : vector<8x1xi1> to vector<8x1xi1>
    %48 = vector.broadcast %47 : vector<8x1xi1> to vector<8x128xi1>
    %49 = vector.broadcast %cst_19 : f32 to vector<8x128xf32>
    %50 = arith.select %48, %46, %49 : vector<8x128xi1>, vector<8x128xf32>
    %c0_20 = arith.constant 0 : index
    %c0_21 = arith.constant 0 : index
    %51 = vector.load %arg4[%c0_20, %c0_21] : memref<8x128xf32, #tpu.memory_space<vmem>>, vector<8x128xf32>
    %cst_22 = arith.constant 0.000000e+00 : f32
    %52 = vector.shape_cast %5 : vector<8x1xi1> to vector<8x1xi1>
    %53 = vector.broadcast %52 : vector<8x1xi1> to vector<8x128xi1>
    %54 = vector.broadcast %cst_22 : f32 to vector<8x128xf32>
    %55 = arith.select %53, %51, %54 : vector<8x128xi1>, vector<8x128xf32>
    %cst_23 = arith.constant dense<0xFF800000> : vector<8xf32>
    %56 = vector.multi_reduction <maximumf>, %50, %cst_23 [1] : vector<8x128xf32> to vector<8xf32>
    %57 = vector.shape_cast %56 : vector<8xf32> to vector<8x1xf32>
    %58 = vector.broadcast %57 : vector<8x1xf32> to vector<8x128xf32>
    %59 = arith.subf %50, %58 : vector<8x128xf32>
    %60 = math.exp %59 : vector<8x128xf32>
    %cst_24 = arith.constant dense<0.000000e+00> : vector<8xf32>
    %61 = vector.multi_reduction <add>, %60, %cst_24 [1] : vector<8x128xf32> to vector<8xf32>
    %62 = vector.shape_cast %61 : vector<8xf32> to vector<8x1xf32>
    %63 = math.log %62 : vector<8x1xf32>
    %64 = vector.broadcast %63 : vector<8x1xf32> to vector<8x128xf32>
    %65 = arith.subf %59, %64 : vector<8x128xf32>
    %cst_25 = arith.constant 0.000000e+00 : f32
    %66 = vector.broadcast %cst_25 : f32 to vector<8x128xf32>
    %67 = arith.cmpf ogt, %55, %66 : vector<8x128xf32>
    %cst_26 = arith.constant 1.000000e+00 : f32
    %68 = vector.broadcast %cst_26 : f32 to vector<8x128xf32>
    %69 = arith.select %67, %55, %68 : vector<8x128xi1>, vector<8x128xf32>
    %cst_27 = arith.constant 0.000000e+00 : f32
    %70 = vector.broadcast %cst_27 : f32 to vector<8x128xf32>
    %71 = arith.cmpf ogt, %55, %70 : vector<8x128xf32>
    %72 = math.log %69 : vector<8x128xf32>
    %73 = arith.subf %72, %65 : vector<8x128xf32>
    %74 = arith.mulf %55, %73 : vector<8x128xf32>
    %cst_28 = arith.constant 0.000000e+00 : f32
    %75 = vector.broadcast %cst_28 : f32 to vector<8x128xf32>
    %76 = arith.select %71, %74, %75 : vector<8x128xi1>, vector<8x128xf32>
    %77 = vector.broadcast %8 : vector<8x1xf32> to vector<8x128xf32>
    %78 = arith.mulf %76, %77 : vector<8x128xf32>
    %cst_29 = arith.constant dense<0.000000e+00> : vector<128xf32>
    %79 = vector.multi_reduction <add>, %78, %cst_29 [0] : vector<8x128xf32> to vector<128xf32>
    %80 = vector.shape_cast %79 : vector<128xf32> to vector<1x128xf32>
    %81 = vector.shape_cast %80 : vector<1x128xf32> to vector<1x1x128xf32>
    %c0_30 = arith.constant 0 : index
    %c0_31 = arith.constant 0 : index
    %c0_32 = arith.constant 0 : index
    %82 = vector.load %arg7[%c0_30, %c0_31, %c0_32] : memref<1x1x128xf32, #tpu.memory_space<vmem>>, vector<1x1x128xf32>
    tpu.vector_store %arg7[%c0_30, %c0_31, %c0_32], %81 {strides = array<i32>} : memref<1x1x128xf32, #tpu.memory_space<vmem>>, vector<1x1x128xf32>,
    return
  }
  func.func @transform_0(%arg0: i32) -> (i32, i32) {
    %c0_i32 = arith.constant 0 : i32
    %c0_i32_0 = arith.constant 0 : i32
    return %arg0, %c0_i32 : i32, i32
  }
  func.func @transform_1(%arg0: i32) -> (i32, i32) {
    %c0_i32 = arith.constant 0 : i32
    %c0_i32_0 = arith.constant 0 : i32
    return %arg0, %c0_i32 : i32, i32
  }
  func.func @transform_2(%arg0: i32) -> (i32, i32) {
    %c0_i32 = arith.constant 0 : i32
    %c0_i32_0 = arith.constant 0 : i32
    return %arg0, %c0_i32 : i32, i32
  }
  func.func @transform_3(%arg0: i32) -> (i32, i32) {
    %c0_i32 = arith.constant 0 : i32
    %c0_i32_0 = arith.constant 0 : i32
    return %arg0, %c0_i32 : i32, i32
  }
  func.func @transform_4(%arg0: i32) -> (i32, i32) {
    %c0_i32 = arith.constant 0 : i32
    %c0_i32_0 = arith.constant 0 : i32
    return %arg0, %c0_i32 : i32, i32
  }
  func.func @transform_5(%arg0: i32) -> (i32, i32, i32) {
    %c0_i32 = arith.constant 0 : i32
    %c0_i32_0 = arith.constant 0 : i32
    %c0_i32_1 = arith.constant 0 : i32
    return %arg0, %c0_i32, %c0_i32_0 : i32, i32, i32
  }
  func.func @transform_6(%arg0: i32) -> (i32, i32, i32) {
    %c0_i32 = arith.constant 0 : i32
    %c0_i32_0 = arith.constant 0 : i32
    %c0_i32_1 = arith.constant 0 : i32
    return %arg0, %c0_i32, %c0_i32_0 : i32, i32, i32
  }
}

</mosaic_0001>

<bundles_post_ra>
// kernel: tpu_custom_call.1
= control target key start
LH: loop header
LB: loop body
LE: loop exit
PB: predicated region body
PF: predicated region fallthrough
CT: control target
= control target key end

     0   :  { %s1356_s0 = inlined_call_operand.hbm [shape: f32[16,256], index: 0, kind: input, shape index: {}]   ;;  %s1357_s1 = inlined_call_operand.hbm [shape: f32[16,256], index: 1, kind: input, shape index: {}]   ;;  %s1358_s2 = inlined_call_operand.vmem [shape: f32[16,128], index: 2, kind: input, shape index: {}]   ;;  %s1359_s3 = inlined_call_operand.hbm [shape: f32[16,128], index: 3, kind: input, shape index: {}]   ;;  %s1360_s4 = inlined_call_operand.vmem [shape: f32[16,1], index: 4, kind: input, shape index: {}]   ;;  %s1361_s5 = inlined_call_operand.hbm [shape: f32[2,1,256], index: 5, kind: output, shape index: {0}]   ;;  %s1362_s6 = inlined_call_operand.hbm [shape: f32[2,1,128], index: 6, kind: output, shape index: {1}]  }
   0x1   :  { %1368 = sst [smem:[#allocation17_spill]] %s1357_s1 }
   0x2   :  { %12 = vsyncpa [#allocation3], 0 }
   0x3   :  { %14 = vsyncpa [#allocation3 + $0x1], 0 }
   0x4   :  { %15 = vsyncpa [#allocation6], 0 }
   0x5   :  { %17 = vsyncpa [#allocation6 + $0x1], 0 }
   0x6   :  { %18 = vsyncpa [#allocation4], 0 }
   0x7   :  { %20 = vsyncpa [#allocation4 + $0x1], 0 }
   0x8   :  { %21 = vsyncpa [#allocation10], 0 }
   0x9   :  { %23 = vsyncpa [#allocation10 + $0x1], 0  ;;  %s1044_s21 = smov 0   ;;  %s1046_s22 = smov 0  }
   0xa   :  { %s1048_s23 = smov 0   ;;  %s1050_s24 = smov 0  }
   0xb LB: > { %1369 = sst [smem:[#allocation15_spill]] %s996_s23  ;;  %s1065_s25 = sadd.s32 4294967295, %s1000_s24   ;;  %s1000_s24 = sphi %s1050_s24, %s1392_s24   ;;  %s996_s23 = sphi %s1048_s23, %s1389_s23   ;;  %s992_s22 = sphi %s1046_s22, %s1391_s22   ;;  %s988_s21 = sphi %s1044_s21, %s1390_s21  }
   0xc   : > { %s700_s26 = sadd.s32 4294967294, %s1000_s24   ;;  %s1069_s27 = sadd.s32 1, %s1000_s24  }
   0xd   : > { %s36_s28 = sadd.s32 1, %s996_s23  ;;  %s33_s29 = ssub.s32 %s1000_s24, %s1069_s27 }
   0xe   : > { %p43_p0 = scmp.ne.s32.totalorder %s996_s23, %s992_s22  ;;  %p34_p1 = scmp.eq.s32.totalorder %s33_s29, 0 }
   0xf   : > { %p44_p2 = scmp.eq.s32.totalorder %s1000_s24, 0  ;;  %p49_p3 = scmp.ne.s32.totalorder %s992_s22, %s988_s21 }
  0x10   : > { %p50_p4 = scmp.eq.s32.totalorder %s1065_s25, 0  ;;  %p177_p7 = scmp.eq.s32.totalorder %s1065_s25, 1 }
  0x11   : > { %s1081_s30 = scalar_select %p34_p1, %s996_s23, %s36_s28  }
  0x12   : > { %p45_p5 = por %p44_p2, %p43_p0  ;;  %p1083_p6 = por %p50_p4, %p49_p3 }
  0x13   : > { %1370 = sst [smem:[#allocation16_spill]] %s1081_s30  ;;  %p183_p8 = scmp.eq.s32.totalorder %s700_s26, 1 }
  0x14   : > { %s1371_s7 = scalar_select %p1083_p6, 1, 0 }
  0x15   : > { %p755_p10 = scmp.lt.s32.totalorder %s1000_s24, 2  ;;  %p1090_p11 = por %p177_p7, %p43_p0 }
  0x16   : > { %p1094_p12 = por %p183_p8, %p49_p3  ;;  %s1099_s10 = sand.u32 1, %s996_s23  }
  0x17   : > { %s1372_s8 = scalar_select %p1090_p11, 1, 0 }
  0x18   : > { %s1373_s9 = scalar_select %p1094_p12, 1, 0 }
  0x19   : > { %s725_s11 = sshll.u32 %s1000_s24, 8  ;;  %s1363_s12 = sshll.u32 %s1099_s10, 4 }
  0x1a   : > { %p1103_p13 = pnand %p755_p10, %p45_p5  ;;  %s248_s14 = sand.u32 1, %s1000_s24  }
  0x1b   : > { %s1375_s1 = sld [smem:[#allocation17_spill]]  ;;  %s252_s18 = scalar_lea.vmem [#allocation5], %s1363_s12 }
  0x1c   : > { %s1374_s13 = scalar_select %p1103_p13, 1, 0 }
  0x1d   : > { %s260_s19 = sshll.u32 %s252_s18, 4  ;;  %s1120_s20 = scalar_lea.sflag [#allocation6], %s248_s14  ;;  %s1117_s19 = int_to_ptr.vmem [resolvable:$true] %s260_s19 }
  0x1e   : > { %p1126_p2 = pneg %p1103_p13 }
  0x21   : > { %s1113_s17 = scalar_lea.hbm %s1375_s1, %s725_s11  ;;  %s813_s16 = scalar_lea.hbm %s1375_s1, 512 }
  0x22   : > { %s808_s26 = scalar_lea.hbm %s1113_s17, 256  ;;  %p814_p5 = scmp.lt.u32.totalorder %s1113_s17, %s1375_s1 }
  0x23   : > { %p809_p1 = scmp.ne.s32.totalorder %s1113_s17, %s808_s26  ;;  %p815_p7 = scmp.lt.u32.totalorder %s813_s16, %s808_s26 }
  0x24   : > { %p817_p10 = scmp.lt.u32.totalorder %s808_s26, %s1113_s17 }
  0x25   : > { %p811_p3 = pnand %p1126_p2, %p809_p1  ;;  %p816_p8 = por %p815_p7, %p814_p5 }
  0x27   : > { %p812_p4 = pneg %p811_p3  ;;  %p818_p9 = por %p817_p10, %p816_p8 }
  0x29   : > { %p819_p0 = pnand %p818_p9, %p812_p4 }
  0x2b   : > { %822 = shalt.err (!%p819_p0)
}
  0x2c   : > { %s823_s14 = scalar_lea.vmem %s1117_s19, 256  ;;  %s1002_s29 = smov [#allocation5]  }
  0x2d   : > { %p824_p1 = scmp.ne.s32.totalorder %s1117_s19, %s823_s14  ;;  %s828_s15 = sshll.u32 %s1002_s29, 4  ;;  %s829_s15 = int_to_ptr.vmem [resolvable:$false] %s828_s15 }
  0x2e   : > { %s830_s12 = scalar_lea.vmem %s829_s15, 512  ;;  %p831_p11 = scmp.lt.s32.totalorder %s1117_s19, %s829_s15 }
  0x2f   : > { %p826_p3 = pnand %p824_p1, %p1126_p2  ;;  %p832_p6 = scmp.lt.s32.totalorder %s830_s12, %s823_s14 }
  0x31   : > { %p827_p12 = pneg %p826_p3  ;;  %p833_p5 = por %p832_p6, %p831_p11 }
  0x33   : > { %p834_p7 = pnand %p833_p5, %p827_p12 }
  0x35   : > { %837 = shalt.err (!%p834_p7)
}
  0x36   : > { %744 = dma.hbm_to_vmem [thread:$0]  (!%p1103_p13), %s1113_s17, 256, %s1117_s19, %s1120_s20  }
  0x37   : > { %p297_p9 = scmp.lt.s32.totalorder %s1000_s24, 3  ;;  %s1156_s18 = scalar_lea.hbm %s1356_s0, %s725_s11 }
  0x38   : > { %p1377_p6 = scmp.ge.s32.totalorder %s1000_s24, 1  ;;  %s1379_s29 = sshll.u32 %s1099_s10, 4 }
  0x39   : > { %s233_s15 = scalar_lea.vmem [#allocation2], %s1379_s29  ;;  %s709_s17 = sshll.u32 %s1099_s10, 3 }
  0x3a   : > { %p1160_p11 = pnand %p1377_p6, %p297_p9  ;;  %s241_s12 = sshll.u32 %s233_s15, 4  ;;  %s1166_s12 = int_to_ptr.vmem [resolvable:$true] %s241_s12 }
  0x3b   : > { %s230_s19 = scalar_lea.sflag [#allocation3], %s1099_s10  ;;  %s838_s1 = scalar_lea.hbm %s1156_s18, 256 }
  0x3c   : > { %s1378_s14 = scalar_select %p1160_p11, 1, 0 }
  0x3d   : > { %p839_p12 = scmp.ne.s32.totalorder %s1156_s18, %s838_s1  ;;  %s843_s16 = scalar_lea.hbm %s1356_s0, 512 }
  0x3e   : > { %p844_p8 = scmp.lt.u32.totalorder %s1156_s18, %s1356_s0  ;;  %p845_p10 = scmp.lt.u32.totalorder %s843_s16, %s838_s1 }
  0x3f   : > { %p841_p0 = pnand %p839_p12, %p1126_p2  ;;  %p847_p3 = scmp.lt.u32.totalorder %s838_s1, %s1156_s18 }
  0x40   : > { %p846_p1 = por %p845_p10, %p844_p8 }
  0x41   : > { %p842_p4 = pneg %p841_p0 }
  0x42   : > { %p848_p5 = por %p847_p3, %p846_p1 }
  0x44   : > { %p849_p7 = pnand %p848_p5, %p842_p4 }
  0x46   : > { %852 = shalt.err (!%p849_p7)
}
  0x47   : > { %s853_s29 = scalar_lea.vmem %s1166_s12, 256  ;;  %s1003_s15 = smov [#allocation2]  }
  0x48   : > { %p854_p9 = scmp.ne.s32.totalorder %s1166_s12, %s853_s29  ;;  %s858_s11 = sshll.u32 %s1003_s15, 4  ;;  %s859_s11 = int_to_ptr.vmem [resolvable:$false] %s858_s11 }
  0x49   : > { %s860_s23 = scalar_lea.vmem %s859_s11, 512  ;;  %p861_p0 = scmp.lt.s32.totalorder %s1166_s12, %s859_s11 }
  0x4a   : > { %p856_p6 = pnand %p854_p9, %p1126_p2  ;;  %p862_p11 = scmp.lt.s32.totalorder %s860_s23, %s853_s29 }
  0x4c   : > { %p857_p12 = pneg %p856_p6  ;;  %p863_p8 = por %p862_p11, %p861_p0 }
  0x4e   : > { %p864_p10 = pnand %p863_p8, %p857_p12 }
  0x50   : > { %867 = shalt.err (!%p864_p10)
}
  0x51   : > { %741 = dma.hbm_to_vmem [thread:$0]  (!%p1103_p13), %s1156_s18, 256, %s1166_s12, %s230_s19  }
  0x52   : > { %s710_s1 = sshll.u32 %s1000_s24, 7  ;;  %s278_s29 = scalar_lea.vmem [#allocation7], %s709_s17 }
  0x53   : > { %s1195_s16 = scalar_lea.hbm %s1359_s3, %s710_s1  ;;  %s285_s15 = sshll.u32 %s278_s29, 4  ;;  %s286_s15 = int_to_ptr.vmem [resolvable:$true] %s285_s15 }
  0x54   : > { %s868_s11 = scalar_lea.hbm %s1195_s16, 128  ;;  %s873_s19 = scalar_lea.hbm %s1359_s3, 256 }
  0x55   : > { %p869_p11 = scmp.ne.s32.totalorder %s1195_s16, %s868_s11  ;;  %p874_p3 = scmp.lt.u32.totalorder %s1195_s16, %s1359_s3 }
  0x56   : > { %p875_p5 = scmp.lt.u32.totalorder %s873_s19, %s868_s11  ;;  %p877_p9 = scmp.lt.u32.totalorder %s868_s11, %s1195_s16 }
  0x57   : > { %p871_p4 = pnand %p869_p11, %p1126_p2 }
  0x58   : > { %p876_p7 = por %p875_p5, %p874_p3 }
  0x59   : > { %p872_p1 = pneg %p871_p4 }
  0x5a   : > { %p878_p6 = por %p877_p9, %p876_p7 }
  0x5c   : > { %p879_p12 = pnand %p878_p6, %p872_p1 }
  0x5e   : > { %882 = shalt.err (!%p879_p12)
}
  0x5f   : > { %s883_s10 = scalar_lea.vmem %s286_s15, 128  ;;  %s1004_s17 = smov [#allocation7]  }
  0x60   : > { %p884_p0 = scmp.ne.s32.totalorder %s286_s15, %s883_s10  ;;  %s888_s30 = sshll.u32 %s1004_s17, 4  ;;  %s889_s30 = int_to_ptr.vmem [resolvable:$false] %s888_s30 }
  0x61   : > { %s890_s26 = scalar_lea.vmem %s889_s30, 256  ;;  %p891_p11 = scmp.lt.s32.totalorder %s286_s15, %s889_s30 }
  0x62   : > { %p886_p8 = pnand %p884_p0, %p1126_p2  ;;  %p892_p4 = scmp.lt.s32.totalorder %s890_s26, %s883_s10 }
  0x64   : > { %p887_p10 = pneg %p886_p8  ;;  %p893_p13 = por %p892_p4, %p891_p11 }
  0x66   : > { %p894_p3 = pnand %p893_p13, %p887_p10 }
  0x68   : > { %897 = shalt.err (!%p894_p3)
}
  0x69   : > { %p1380_p5 = scmp.ne.s32.totalorder %s1374_s13, 0  ;;  %p1381_p1 = scmp.ne.s32.totalorder %s1378_s14, 0 }
  0x6a   : > { %s1220_s28 = sand.u32 (!%p1381_p1), 1, %s992_s22   ;;  %p1382_p2 = scmp.ne.s32.totalorder (!%p1381_p1), %s1371_s7, 0 }
  0x6b   : > { %747 = dma.hbm_to_vmem [thread:$0]  (!%p1380_p5), %s1195_s16, 128, %s286_s15, %s1120_s20  }
  0x6c   : > { %301 = sbr.rel (%p1381_p1) target bundleno = 506 (0x1fa), region = 40  ;;  %s712_s29 = sshll.u32 (!%p1381_p1), %s1220_s28, 4 }
  0x6d   : > { %s304_s11 = scalar_lea.sflag (!%p1381_p1), [#allocation3], %s1220_s28  ;;  %s307_s18 = scalar_lea.vmem (!%p1381_p1), [#allocation2], %s712_s29 }
  0x73   : > { %971 = dma.done.wait (%p1382_p2), %s304_s11, 256  }
  0x74   : > { %973 = vsyncadd (%p1382_p2), %s304_s11, 4294967040  ;;  %s312_s13 = sand.u32 1, %s1065_s25   ;;  %s1229_s14 = scalar_lea.vmem [#allocation5], %s712_s29 }
  0x75   : > { %s313_s20 = scalar_lea.sflag [#allocation6], %s312_s13 }
  0x76   : > { %975 = dma.done.wait (%p1382_p2), %s313_s20, 384  }
  0x77   : > { %977 = vsyncadd (%p1382_p2), %s313_s20, 4294966912  ;;  %s718_s16 = sshll.u32 %s1065_s25, 3  ;;  %v385_v0 = vlaneseq  ;;  %p376_p13 = scmp.lt.s32.totalorder %s1065_s25, 1  ;;  %v392_v4 = vld [vmem:[%s307_s18] sm:$0xff]  ;;  %v393_v5 = vld [vmem:[%s307_s18 + $0x8] sm:$0xff]  ;;  %v1005_v11 = vmov 0  }
  0x78   : > { %v387_v1 = vstv %s718_s16  ;;  %791 = vset.pattern.permute.xlu0 %v1005_v11  ;;  %s714_s30 = sshll.u32 %s1220_s28, 3  ;;  %v398_v26 = vld [vmem:[%s1229_s14] sm:$0xff]  ;;  %v399_v27 = vld [vmem:[%s1229_s14 + $0x8] sm:$0xff]  ;;  %s715_s29 = sshll.u32 %s1220_s28, 1 }
  0x79   : > { %v1238_v2 = vshrl.u32 %v385_v0, 7  ;;  %s377_s15 = scalar_select %p376_p13, %s1065_s25, 1  ;;  %vm1280_vm4 = vcmp.lt.s32.totalorder %v385_v0, 256 }
  0x7a   : > { %s325_s26 = scalar_lea.vmem [#allocation7], %s714_s30  ;;  %s722_s11 = sshll.u32 %s1065_s25, 4 }
  0x7b   : > { %v388_v3 = vadd.s32 %v387_v1, %v1238_v2  ;;  %s716_s12 = sshll.u32 %s377_s15, 3  ;;  %v476_v30 = vld [vmem:[%s325_s26] sm:$0xff]  ;;  %v1006_v1 = vmov 1966171168   ;;  %s375_s18 = scalar_lea.vmem [#allocation9], %s1220_s28 }
  0x7c   : > { %s379_s7 = scalar_lea.vmem %s1358_s2, %s716_s12  ;;  %s383_s17 = scalar_lea.vmem %s1360_s4, %s716_s12 }
  0x7d   : > { %vm389_vm0 = vcmp.lt.s32.totalorder %v388_v3, 16  ;;  %v474_v9 = vld [vmem:[%s379_s7] sm:$0xff]  ;;  %v455_v3 = vunpack.c.l.s4 %v1006_v1  ;;  %s535_s13 = sshll.u32 %s375_s18, 4  ;;  %s727_s20 = sshll.u32 %s1065_s25, 5  ;;  %s1277_s13 = int_to_ptr.vmem [resolvable:$true] %s535_s13 }
  0x7e   : > { %v396_v6 = vsel %vm389_vm0, %v392_v4, 0.0  ;;  %v397_v7 = vsel %vm389_vm0, %v393_v5, 0.0  ;;  %v475_v10 = vsel %vm389_vm0, %v474_v9, 0.0  ;;  %v390_v12 = vld [vmem:[%s383_s17] sm:$0xff]  ;;  %v400_v28 = vsel %vm389_vm0, %v398_v26, 0.0  ;;  %s1269_s14 = scalar_lea.vmem [#allocation8], %s715_s29  ;;  %s1275_s19 = scalar_lea.hbm %s1362_s6, %s722_s11 }
  0x7f   : > { %v402_v8 = vmax.f32 %v396_v6, %v397_v7  ;;  %v391_v13 = vsel %vm389_vm0, %v390_v12, 0.0  ;;  %v401_v29 = vsel %vm389_vm0, %v399_v27, 0.0  ;;  %vm418_vm1 = vcmp.gt.f32.partialorder %v400_v28, 0.0  ;;  %s522_s16 = sshll.u32 %s1269_s14, 4  ;;  %s1287_s7 = scalar_lea.hbm %s1361_s5, %s727_s20  ;;  %s1289_s16 = int_to_ptr.vmem [resolvable:$true] %s522_s16 }
  0x80   : > { %vm419_vm2 = vcmp.gt.f32.partialorder %v401_v29, 0.0  ;;  %v477_v31 = vsel %vm389_vm0, %v476_v30, 0.0  ;;  %v420_v32 = vsel %vm418_vm1, %v400_v28, 1.0  ;;  %s509_s1 = scalar_lea.sflag [#allocation10], %s1220_s28  ;;  %s898_s10 = scalar_lea.vmem %s1277_s13, 16 }
  0x81   : > { %403 = vmax.xlane.f32.xlu0 %v402_v8  ;;  %v421_v33 = vsel %vm419_vm2, %v401_v29, 1.0  ;;  %vm488_vm3 = vcmp.gt.f32.partialorder %v477_v31, 0.0  ;;  %p899_p7 = scmp.ne.s32.totalorder %s1277_s13, %s898_s10  ;;  %p1385_p9 = scmp.ne.s32.totalorder %s1372_s8, 0 }
  0x82   : > { %v489_v35 = vsel %vm488_vm3, %v477_v31, 1.0  ;;  %s1007_s17 = smov [#allocation9]  }
  0x83   : > { %p900_p6 = pnand %p899_p7, %p1385_p9  ;;  %s902_s30 = sshll.u32 %s1007_s17, 4  ;;  %s903_s30 = int_to_ptr.vmem [resolvable:$false] %s902_s30 }
  0x84   : > { %s904_s26 = scalar_lea.vmem %s903_s30, 32  ;;  %p905_p0 = scmp.lt.s32.totalorder %s1277_s13, %s903_s30 }
  0x85   : > { %478 = vmax.xlane.f32.xlu0 %v475_v10  ;;  %p901_p12 = pneg %p900_p6  ;;  %p906_p8 = scmp.lt.s32.totalorder %s904_s26, %s898_s10 }
  0x87   : > { %p907_p10 = por %p906_p8, %p905_p0 }
  0x89   : > { %p908_p11 = pnand %p907_p10, %p901_p12 }
  0x9b   : > { %434 = vperm.xlu0 %791, %v391_v13  }
 0x10e   : > { %v404_v14 = vpop.xlane.xlu0 %403 }
 0x10f   : > { %v405_v15 = vsub.f32 %v396_v6, %v404_v14  ;;  %v406_v16 = vsub.f32 %v397_v7, %v404_v14 }
 0x111   : > { %v407_v17 = vmul.f32 1.442695, %v405_v15  ;;  %v409_v18 = vmul.f32 1.442695, %v406_v16 }
 0x112   : > { %v479_v19 = vpop.xlane.xlu0 %478 }
 0x113   : > { %792 = vpow2.f32 %v407_v17  ;;  %v480_v20 = vsub.f32 %v475_v10, %v479_v19  ;;  %v456_v10 = vunpack.c.0.s8 %v455_v3 }
 0x114   : > { %794 = vpow2.f32 %v409_v18 }
 0x115   : > { %v481_v21 = vmul.f32 1.442695, %v480_v20  ;;  %v459_v17 = vsub.s32 %v456_v10, %v1238_v2 }
 0x117   : > { %796 = vpow2.f32 %v481_v21 }
 0x118   : > { %798 = vlog2.f32 %v420_v32 }
 0x119   : > { %800 = vlog2.f32 %v421_v33 }
 0x11a   : > { %v435_v54 = vpop.permute.xlu0 %434 }
 0x11d   : > { %v793_v22 = vpop.eup %792 }
 0x11e   : > { %v795_v23 = vpop.eup %794 }
 0x11f   : > { %v411_v24 = vadd.f32 %v795_v23, %v793_v22 }
 0x121   : > { %412 = vadd.xlane.f32.xlu1 %v411_v24  ;;  %v797_v25 = vpop.eup %796 }
 0x122   : > { %v799_v37 = vpop.eup %798 }
 0x123   : > { %v801_v38 = vpop.eup %800  ;;  %v423_v41 = vmul.f32 0.6931472, %v799_v37 }
 0x124   : > { %v425_v42 = vmul.f32 0.6931472, %v801_v38 }
 0x125   : > { %483 = vadd.xlane.f32.xlu1 %v797_v25 }
 0x1ae   : > { %v413_v34 = vpop.xlane.xlu1 %412 }
 0x1af   : > { %802 = vlog2.f32 %v413_v34 }
 0x1b0   : > { %804 = vlog2.f32 %v489_v35 }
 0x1b2   : > { %v484_v36 = vpop.xlane.xlu1 %483 }
 0x1b3   : > { %806 = vlog2.f32 %v484_v36 }
 0x1b9   : > { %v803_v39 = vpop.eup %802 }
 0x1ba   : > { %v415_v40 = vmul.f32 0.6931472, %v803_v39  ;;  %v805_v43 = vpop.eup %804 }
 0x1bb   : > { %v491_v50 = vmul.f32 0.6931472, %v805_v43 }
 0x1bc   : > { %v416_v44 = vsub.f32 %v405_v15, %v415_v40  ;;  %v417_v45 = vsub.f32 %v406_v16, %v415_v40 }
 0x1bd   : > { %v807_v46 = vpop.eup %806 }
 0x1be   : > { %v486_v47 = vmul.f32 0.6931472, %v807_v46  ;;  %v426_v48 = vsub.f32 %v423_v41, %v416_v44  ;;  %v427_v49 = vsub.f32 %v425_v42, %v417_v45 }
 0x1c0   : > { %v487_v51 = vsub.f32 %v480_v20, %v486_v47  ;;  %v428_v52 = vmul.f32 %v426_v48, %v400_v28  ;;  %v429_v53 = vmul.f32 %v427_v49, %v401_v29 }
 0x1c2   : > { %v430_v55 = vsel %vm418_vm1, %v428_v52, 0.0  ;;  %v431_v56 = vsel %vm419_vm2, %v429_v53, 0.0  ;;  %v492_v57 = vsub.f32 %v491_v50, %v487_v51 }
 0x1c3   : > { %v437_v58 = vmul.f32 %v435_v54, %v430_v55  ;;  %v438_v59 = vmul.f32 %v435_v54, %v431_v56 }
 0x1c4   : > { %v493_v60 = vmul.f32 %v492_v57, %v477_v31 }
 0x1c5   : > { %v439_v61 = vrot.slane %v437_v58, 4  ;;  %v445_v62 = vrot.slane %v438_v59, 4 }
 0x1c6   : > { %v494_v63 = vsel %vm488_vm3, %v493_v60, 0.0 }
 0x1c7   : > { %v440_v4 = vadd.f32 %v439_v61, %v437_v58  ;;  %v446_v5 = vadd.f32 %v445_v62, %v438_v59  ;;  %v495_v6 = vmul.f32 %v494_v63, %v435_v54 }
 0x1c9   : > { %v441_v7 = vrot.slane %v440_v4, 2  ;;  %v447_v8 = vrot.slane %v446_v5, 2  ;;  %v496_v9 = vrot.slane %v495_v6, 4 }
 0x1cb   : > { %v442_v11 = vadd.f32 %v441_v7, %v440_v4  ;;  %v448_v12 = vadd.f32 %v447_v8, %v446_v5  ;;  %v497_v13 = vadd.f32 %v496_v9, %v495_v6 }
 0x1cd   : > { %v443_v14 = vrot.slane %v442_v11, 1  ;;  %v449_v15 = vrot.slane %v448_v12, 1  ;;  %v498_v16 = vrot.slane %v497_v13, 2 }
 0x1cf   : > { %v444_v18 = vadd.f32 %v443_v14, %v442_v11  ;;  %v450_v19 = vadd.f32 %v449_v15, %v448_v12  ;;  %v499_v20 = vadd.f32 %v498_v16, %v497_v13 }
 0x1d1   : > { %v453_v21 = vcombine.low %v444_v18, %v450_v19  ;;  %v500_v22 = vrot.slane %v499_v20, 1 }
 0x1d3   : > { %v460_v23 = vrot.slane %v453_v21, %v459_v17  ;;  %v501_v24 = vadd.f32 %v500_v22, %v499_v20 }
 0x1d5   : > { %v467_v25 = vrot.slane %v460_v23, %v459_v17  ;;  %502 = vst [vmem:[%s375_s18] sm:$0x1] %v501_v24 }
 0x1d6   : > { %911 = shalt.err (!%p908_p11)
}
 0x1d7   : > { %s912_s29 = scalar_lea.hbm %s1275_s19, 16  ;;  %s916_s20 = scalar_lea.hbm %s1362_s6, 32 }
 0x1d8   : > { %p913_p4 = scmp.ne.s32.totalorder %s1275_s19, %s912_s29  ;;  %p917_p1 = scmp.lt.u32.totalorder %s1275_s19, %s1362_s6 }
 0x1d9   : > { %p918_p2 = scmp.lt.u32.totalorder %s916_s20, %s912_s29  ;;  %p920_p7 = scmp.lt.u32.totalorder %s912_s29, %s1275_s19 }
 0x1da   : > { %p914_p3 = pnand %p913_p4, %p1385_p9 }
 0x1db   : > { %p919_p13 = por %p918_p2, %p917_p1 }
 0x1dc   : > { %p915_p5 = pneg %p914_p3 }
 0x1dd   : > { %p921_p6 = por %p920_p7, %p919_p13 }
 0x1df   : > { %p922_p12 = pnand %p921_p6, %p915_p5 }
 0x1e1   : > { %925 = shalt.err (!%p922_p12)
}
 0x1e2   : > { %735 = dma.vmem_to_hbm [thread:$0]  (%p1385_p9), %s1277_s13, 16, %s1275_s19, %s509_s1   ;;  %473 = vst.msk [vmem:[%s1269_s14] sm:$0x3] %vm1280_vm4, %v467_v25 }
 0x1e3   : > { %s504_s25 = scalar_lea.sflag [#allocation4], %s1220_s28  ;;  %s926_s23 = scalar_lea.vmem %s1289_s16, 32 }
 0x1e4   : > { %p927_p0 = scmp.ne.s32.totalorder %s1289_s16, %s926_s23  ;;  %s1008_s10 = smov [#allocation8]  }
 0x1e5   : > { %s930_s17 = sshll.u32 %s1008_s10, 4  ;;  %s931_s17 = int_to_ptr.vmem [resolvable:$false] %s930_s17 }
 0x1e6   : > { %p928_p8 = pnand %p927_p0, %p1385_p9  ;;  %s932_s30 = scalar_lea.vmem %s931_s17, 64 }
 0x1e7   : > { %p933_p11 = scmp.lt.s32.totalorder %s1289_s16, %s931_s17  ;;  %p934_p4 = scmp.lt.s32.totalorder %s932_s30, %s926_s23 }
 0x1e8   : > { %p929_p10 = pneg %p928_p8 }
 0x1e9   : > { %p935_p3 = por %p934_p4, %p933_p11 }
 0x1eb   : > { %p936_p5 = pnand %p935_p3, %p929_p10 }
 0x1ed   : > { %939 = shalt.err (!%p936_p5)
}
 0x1ee   : > { %s940_s28 = scalar_lea.hbm %s1287_s7, 32  ;;  %s944_s19 = scalar_lea.hbm %s1361_s5, 64 }
 0x1ef   : > { %p941_p1 = scmp.ne.s32.totalorder %s1287_s7, %s940_s28  ;;  %p945_p7 = scmp.lt.u32.totalorder %s1287_s7, %s1361_s5 }
 0x1f0   : > { %p946_p6 = scmp.lt.u32.totalorder %s944_s19, %s940_s28  ;;  %p948_p0 = scmp.lt.u32.totalorder %s940_s28, %s1287_s7 }
 0x1f1   : > { %p942_p2 = pnand %p941_p1, %p1385_p9 }
 0x1f2   : > { %p947_p12 = por %p946_p6, %p945_p7 }
 0x1f3   : > { %p943_p13 = pneg %p942_p2 }
 0x1f4   : > { %p949_p8 = por %p948_p0, %p947_p12 }
 0x1f6   : > { %p950_p10 = pnand %p949_p8, %p943_p13 }
 0x1f8   : > { %953 = shalt.err (!%p950_p10)
}
 0x1f9   : > { %734 = dma.vmem_to_hbm [thread:$0]  (%p1385_p9), %s1289_s16, 32, %s1287_s7, %s504_s25  }
 0x1fa PF: > { %s547_s29 = sand.u32 1, %s988_s21   ;;  %p1386_p11 = scmp.ne.s32.totalorder %s1373_s9, 0 }
 0x1fb   : > { %p1387_p4 = scmp.ge.s32.totalorder %s1000_s24, 2  ;;  %s548_s11 = scalar_lea.sflag [#allocation4], %s547_s29 }
 0x1fd   : > { %p749_p3 = pnand %p1387_p4, %p1386_p11 }
 0x1ff   : > { %979 = dma.done.wait (!%p749_p3), %s548_s11, 32  }
 0x200   : > { %981 = vsyncadd (!%p749_p3), %s548_s11, 4294967264  ;;  %s557_s18 = scalar_lea.sflag [#allocation10], %s547_s29 }
 0x201   : > { %983 = dma.done.wait (!%p749_p3), %s557_s18, 16  }
 0x202   : > { %985 = vsyncadd (!%p749_p3), %s557_s18, 4294967280  ;;  %s1388_s8 = sld [smem:[#allocation15_spill]]  ;;  %s1389_s23 = sld [smem:[#allocation16_spill]] }
 0x203   : > { %p26_p9 = scmp.ge.s32.totalorder %s1069_s27, 4   ;;  %s1390_s21 = smov %s992_s22 }
 0x204   : > { %s1392_s24 = smov %s1069_s27 }
 0x205   :  { %28 = sbr.rel (!%p26_p9) target bundleno = 11 (0xb), region = 132 }
 0x208   : > { %s1391_s22 = smov %s1388_s8 }
 0x20c   :  { %561 = vsyncpa [#allocation3], 1 }
 0x20d   :  { %563 = vsyncpa [#allocation3 + $0x1], 1 }
 0x20e   :  { %564 = vsyncpa [#allocation6], 1 }
 0x20f   :  { %566 = vsyncpa [#allocation6 + $0x1], 1 }
 0x210   :  { %567 = vsyncpa [#allocation4], 1 }
 0x211   :  { %569 = vsyncpa [#allocation4 + $0x1], 1 }
 0x212   :  { %570 = vsyncpa [#allocation10], 1 }
 0x213   :  { %572 = vsyncpa [#allocation10 + $0x1], 1 }

</bundles_post_ra>
